<compile_context>
chip_gen: v5e
topology: v5e:2x2
jax: 0.10.0
libtpu: 0.0.40
codegen_flags: <defaults>
</compile_context>

<pallas_src>
import functools

import jax
import jax.numpy as jnp
from jax import lax
from jax.experimental import pallas as pl
from jax.experimental.pallas import tpu as pltpu

_MIB = 1024 * 1024
_VMEM_LIMIT_BYTES = 40 * _MIB   # safe on v5e/v6e (128 MiB phys) and v7x (64 MiB)
_OUT_TILE_BUDGET = 16 * _MIB    # double-buffered output tile budget
_TOTAL_BUF_BUDGET = 28 * _MIB   # all double-buffered blocks must fit here


def _round_up(x, m):
    return ((x + m - 1) // m) * m


def _sigmoid(x):
    # sigmoid(x) == 0.5 * tanh(x/2) + 0.5 : single EUP transcendental, no divide.
    return 0.5 * jnp.tanh(0.5 * x) + 0.5


def _ipd_resident_kernel(z_ref, o_ref, *, block_m, block_n):
    """z fully VMEM-resident; slice both operands from the same copy."""
    i = pl.program_id(0)
    j = pl.program_id(1)
    zi = z_ref[pl.ds(pl.multiple_of(i * block_m, block_m), block_m), :]
    zj = z_ref[pl.ds(pl.multiple_of(j * block_n, block_n), block_n), :]
    logits = lax.dot_general(
        zi, zj,
        dimension_numbers=(((1,), (1,)), ((), ())),   # z_i . z_j^T, no transpose
        preferred_element_type=jnp.float32,
    )
    o_ref[...] = _sigmoid(logits).astype(o_ref.dtype)


def _ipd_stream_kernel(zi_ref, zj_ref, o_ref):
    """Fallback: row blocks streamed per grid step (huge N)."""
    logits = lax.dot_general(
        zi_ref[...], zj_ref[...],
        dimension_numbers=(((1,), (1,)), ((), ())),
        preferred_element_type=jnp.float32,
    )
    o_ref[...] = _sigmoid(logits).astype(o_ref.dtype)


def _pick_tile(n_pad, out_itemsize):
    for cand in (1024, 512, 256, 128):
        if n_pad % cand == 0 and 2 * cand * cand * out_itemsize <= _OUT_TILE_BUDGET:
            return cand
    return 128


def inner_product_decoder(z, *, dropout_p=0.1, rng_key=None,
                          out_dtype=None, compute_dtype=None,
                          block_m=None, block_n=None, resident=None):
    """Pallas implementation of InnerProductDecoder.forward.

    z:       (N, D) latent matrix (rows = nodes).
    returns: (N, N) adjacency = sigmoid(dropout(z) @ dropout(z).T).
    """
    n, d = z.shape
    out_dtype = z.dtype if out_dtype is None else jnp.dtype(out_dtype)
    compute_dtype = z.dtype if compute_dtype is None else jnp.dtype(compute_dtype)
    out_itemsize = jnp.dtype(out_dtype).itemsize
    cmp_itemsize = jnp.dtype(compute_dtype).itemsize

    # --- 1) Dropout once, outside the O(N^2) kernel, scale applied in f32. ---
    dropout_p = float(dropout_p)
    if dropout_p > 0.0:
        if rng_key is None:
            rng_key = jax.random.PRNGKey(0)
        bits = jax.random.bits(rng_key, (n, d), dtype=jnp.uint32)
        # keep iff bits >= p * 2^32  (keep prob = 1 - p)
        thr = jnp.uint32(min(int(round(dropout_p * (2 ** 32))), 2 ** 32 - 1))
        scale = 1.0 / (1.0 - dropout_p)
        z_work = jnp.where(bits >= thr, z.astype(jnp.float32) * scale, 0.0)
    else:
        z_work = z.astype(jnp.float32)
    z_work = z_work.astype(compute_dtype)

    # --- 2) Pad N to a multiple of 128 (lane-dense stores, no full-N block). ---
    n_pad = max(_round_up(n, 128), 128)
    if n_pad != n:
        z_work = jnp.pad(z_work, ((0, n_pad - n), (0, 0)))

    # --- 3) Tile selection under a generation-safe VMEM budget. ---
    if block_m is None:
        block_m = _pick_tile(n_pad, out_itemsize)
    if block_n is None:
        block_n = block_m
    assert n_pad % block_m == 0 and n_pad % block_n == 0, \
        "block sizes must divide padded N"
    out_buf_bytes = 2 * block_m * block_n * out_itemsize

    d_lanes = _round_up(d, 128)                    # VMEM lane padding estimate
    z_resident_bytes = 2 * n_pad * d_lanes * cmp_itemsize
    if resident is None:
        resident = out_buf_bytes + z_resident_bytes <= _TOTAL_BUF_BUDGET

    grid = (n_pad // block_m, n_pad // block_n)

    if resident:
        kernel = functools.partial(_ipd_resident_kernel,
                                   block_m=block_m, block_n=block_n)
        in_specs = [pl.BlockSpec((n_pad, d), lambda i, j: (0, 0))]
        args = (z_work,)
        in_bytes = n_pad * d * cmp_itemsize                     # read once
    else:
        kernel = _ipd_stream_kernel
        in_specs = [
            pl.BlockSpec((block_m, d), lambda i, j: (i, 0)),    # lhs rows
            pl.BlockSpec((block_n, d), lambda i, j: (j, 0)),    # rhs rows
        ]
        args = (z_work, z_work)
        # lhs re-fetched once per i-block; rhs re-fetched every grid step.
        in_bytes = (n_pad * d + grid[0] * n_pad * d) * cmp_itemsize

    out = pl.pallas_call(
        kernel,
        out_shape=jax.ShapeDtypeStruct((n_pad, n_pad), out_dtype),
        grid=grid,
        in_specs=in_specs,
        out_specs=pl.BlockSpec((block_m, block_n), lambda i, j: (i, j)),
        compiler_params=pltpu.CompilerParams(
            # Independent (i, j) output blocks -> shard across TCs on v7x.
            dimension_semantics=("parallel", "parallel"),
            vmem_limit_bytes=_VMEM_LIMIT_BYTES,
        ),
        cost_estimate=pl.CostEstimate(
            flops=2 * n_pad * n_pad * d,
            transcendentals=n_pad * n_pad,
            bytes_accessed=in_bytes + n_pad * n_pad * out_itemsize,
        ),
    )(*args)

    if n_pad != n:
        out = out[:n, :n]
    return out


if __name__ == "__main__":
    key = jax.random.PRNGKey(0)
    k_z, k_drop = jax.random.split(key)

    # Small graph consistent with the module: N nodes, latent dim D.
    N, D = 8, 32
    z = jax.random.normal(k_z, (N, D), dtype=jnp.float32)

    # 1) Forward with dropout (training semantics of the module).
    adj = jax.block_until_ready(
        inner_product_decoder(z, dropout_p=0.1, rng_key=k_drop))
    assert adj.shape == (N, N) and adj.dtype == jnp.float32
    # Reference built from the SAME dropout bits.
    bits = jax.random.bits(k_drop, (N, D), dtype=jnp.uint32)
    thr = jnp.uint32(min(int(round(0.1 * (2 ** 32))), 2 ** 32 - 1))
    z_drop = jnp.where(bits >= thr, z * (1.0 / 0.9), 0.0)
    ref_drop = jax.nn.sigmoid(z_drop @ z_drop.T)
    assert jnp.allclose(adj, ref_drop, atol=1e-5, rtol=1e-5)

    # 2) Deterministic path (dropout disabled) against pure JAX.
    adj_nodrop = jax.block_until_ready(inner_product_decoder(z, dropout_p=0.0))
    ref = jax.nn.sigmoid(z @ z.T)
    assert jnp.allclose(adj_nodrop, ref, atol=1e-5, rtol=1e-5)

    # 3) Multi-block resident path + N padding (N=200 -> padded to 256, 2x2 grid).
    N2, D2 = 200, 32
    z2 = jax.random.normal(k_z, (N2, D2), dtype=jnp.float32)
    adj2 = jax.block_until_ready(
        inner_product_decoder(z2, dropout_p=0.0, block_m=128, block_n=128))
    ref2 = jax.nn.sigmoid(z2 @ z2.T)
    assert adj2.shape == (N2, N2)
    assert jnp.allclose(adj2, ref2, atol=1e-4, rtol=1e-4)

    # 4) Streaming fallback path (forced) for coverage.
    adj3 = jax.block_until_ready(
        inner_product_decoder(z2, dropout_p=0.0, block_m=128, block_n=128,
                              resident=False))
    assert jnp.allclose(adj3, ref2, atol=1e-4, rtol=1e-4)

    print("KERNEL_OK")
</pallas_src>

<mosaic_0001>
module attributes {stable_mosaic.version = 11 : i64} {
  func.func @_ipd_resident_kernel(%arg0: i32, %arg1: i32, %arg2: memref<128x32xf32, #tpu.memory_space<vmem>>, %arg3: memref<128x128xf32, #tpu.memory_space<vmem>>) attributes {dimension_semantics = [#tpu.dimension_semantics<parallel>, #tpu.dimension_semantics<parallel>], iteration_bounds = array<i64: 1, 1>, scalar_prefetch = 0 : i64, scratch_operands = 0 : i64, tpu.core_type = #tpu.core_type<tc>, window_params = [{pipeline_mode = #tpu.pipeline_mode<synchronous>, transform_indices = @transform_0, window_bounds = array<i64: 128, 32>}, {transform_indices = @transform_1, window_bounds = array<i64: 128, 128>}]} {
    %c128_i32 = arith.constant 128 : i32
    %0 = arith.muli %arg0, %c128_i32 : i32
    %1 = tpu.assume_multiple %0, 128 : i32
    %2 = arith.index_cast %1 : i32 to index
    %c0 = arith.constant 0 : index
    %3 = vector.load %arg2[%2, %c0] : memref<128x32xf32, #tpu.memory_space<vmem>>, vector<128x32xf32>
    %c128_i32_0 = arith.constant 128 : i32
    %4 = arith.muli %arg1, %c128_i32_0 : i32
    %5 = tpu.assume_multiple %4, 128 : i32
    %6 = arith.index_cast %5 : i32 to index
    %c0_1 = arith.constant 0 : index
    %7 = vector.load %arg2[%6, %c0_1] : memref<128x32xf32, #tpu.memory_space<vmem>>, vector<128x32xf32>
    %cst = arith.constant dense<0.000000e+00> : vector<128x128xf32>
    %8 = tpu.matmul %3, %7, %cst {dimension_numbers = #tpu.dot_dimension_numbers<[1], [1], [0], [0], [0, 0, 1, 0], [], []>} : vector<128x32xf32>, vector<128x32xf32>, vector<128x128xf32> -> vector<128x128xf32>
    %cst_2 = arith.constant 5.000000e-01 : f32
    %9 = vector.broadcast %cst_2 : f32 to vector<128x128xf32>
    %10 = arith.mulf %9, %8 : vector<128x128xf32>
    %11 = math.tanh %10 : vector<128x128xf32>
    %cst_3 = arith.constant 5.000000e-01 : f32
    %12 = vector.broadcast %cst_3 : f32 to vector<128x128xf32>
    %13 = arith.mulf %12, %11 : vector<128x128xf32>
    %cst_4 = arith.constant 5.000000e-01 : f32
    %14 = vector.broadcast %cst_4 : f32 to vector<128x128xf32>
    %15 = arith.addf %13, %14 : vector<128x128xf32>
    %c0_5 = arith.constant 0 : index
    %c0_6 = arith.constant 0 : index
    %16 = vector.load %arg3[%c0_5, %c0_6] : memref<128x128xf32, #tpu.memory_space<vmem>>, vector<128x128xf32>
    tpu.vector_store %arg3[%c0_5, %c0_6], %15 {strides = array<i32>} : memref<128x128xf32, #tpu.memory_space<vmem>>, vector<128x128xf32>,
    return
  }
  func.func @transform_0(%arg0: i32, %arg1: i32) -> (i32, i32) {
    %c0_i32 = arith.constant 0 : i32
    %c0_i32_0 = arith.constant 0 : i32
    %c0_i32_1 = arith.constant 0 : i32
    return %c0_i32, %c0_i32_0 : i32, i32
  }
  func.func @transform_1(%arg0: i32, %arg1: i32) -> (i32, i32) {
    %c0_i32 = arith.constant 0 : i32
    return %arg0, %arg1 : i32, i32
  }
}

</mosaic_0001>

<bundles_post_ra>
// kernel: tpu_custom_call.1
= control target key start
LH: loop header
LB: loop body
LE: loop exit
PB: predicated region body
PF: predicated region fallthrough
CT: control target
= control target key end

     0   :  { %vm45_vm0 = vcmask 261120   ;;  %s632_s0 = inlined_call_operand.vmem [shape: f32[128,32], index: 0, kind: input, shape index: {}]   ;;  %s633_s1 = inlined_call_operand.hbm [shape: f32[128,128], index: 1, kind: output, shape index: {}]  }
   0x1   :  { %v462_v0 = vld [vmem:[%s632_s0 + $0x78] sm:$0xff]  ;;  %v471_v1 = vld [vmem:[%s632_s0 + $0x70] sm:$0xff] }
   0x2   :  { %338 = vmatpush.xpose.msk.msra.mxu2 %vm45_vm0, %v462_v0  ;;  %339 = vmatpush.xpose.msk.msra.mxu3 %vm45_vm0, %v462_v0 }
   0x3   :  { %305 = vmatpush.xpose.msk.msra.mxu0 %vm45_vm0, %v462_v0  ;;  %337 = vmatpush.xpose.msk.msra.mxu1 %vm45_vm0, %v462_v0 }
   0x4   :  { %6 = vsyncpa [#allocation3], 0  ;;  %v484_v2 = vld [vmem:[%s632_s0 + $0x68] sm:$0xff]  ;;  %v497_v3 = vld [vmem:[%s632_s0 + $0x60] sm:$0xff]  ;;  %s293_s12 = sshll.u32 %s633_s1, 4  ;;  %s447_s13 = smov 128   ;;  %s294_s12 = int_to_ptr.hbm [resolvable:$true] %s293_s12 }
   0x5   :  { %v510_v4 = vld [vmem:[%s632_s0 + $0x58] sm:$0xff]  ;;  %v523_v5 = vld [vmem:[%s632_s0 + $0x50] sm:$0xff]  ;;  %v38_v6 = vld [vmem:[%s632_s0 + $0x48] sm:$0xff]  ;;  %s448_s14 = smov 8  }
   0x6   :  { %341 = vmatpush.xpose.msk.msra.mxu2 %vm45_vm0, %v471_v1  ;;  %342 = vmatpush.xpose.msk.msra.mxu3 %vm45_vm0, %v471_v1  ;;  %v37_v7 = vld [vmem:[%s632_s0 + $0x40] sm:$0xff]  ;;  %v36_v8 = vld [vmem:[%s632_s0 + $0x38] sm:$0xff]  ;;  %v35_v9 = vld [vmem:[%s632_s0 + $0x30] sm:$0xff] }
   0x7   :  { %306 = vmatpush.xpose.msk.msra.mxu0 %vm45_vm0, %v471_v1  ;;  %340 = vmatpush.xpose.msk.msra.mxu1 %vm45_vm0, %v471_v1  ;;  %v34_v10 = vld [vmem:[%s632_s0 + $0x28] sm:$0xff]  ;;  %v33_v11 = vld [vmem:[%s632_s0 + $0x20] sm:$0xff]  ;;  %v32_v12 = vld [vmem:[%s632_s0 + $0x18] sm:$0xff] }
   0x8   :  { %v31_v13 = vld [vmem:[%s632_s0 + $0x10] sm:$0xff]  ;;  %v30_v14 = vld [vmem:[%s632_s0 + $0x8] sm:$0xff]  ;;  %v29_v15 = vld [vmem:[%s632_s0] sm:$0xff]  ;;  %s446_s0 = smov [#allocation2]  }
   0x9   :  { %s291_s9 = sshll.u32 %s446_s0, 4  ;;  %s292_s9 = int_to_ptr.vmem [resolvable:$true] %s291_s9 }
   0xa   :  { %344 = vmatpush.xpose.msk.msra.mxu2 %vm45_vm0, %v484_v2  ;;  %345 = vmatpush.xpose.msk.msra.mxu3 %vm45_vm0, %v484_v2 }
   0xb   :  { %307 = vmatpush.xpose.msk.msra.mxu0 %vm45_vm0, %v484_v2  ;;  %343 = vmatpush.xpose.msk.msra.mxu1 %vm45_vm0, %v484_v2 }
   0xe   :  { %347 = vmatpush.xpose.msk.msra.mxu2 %vm45_vm0, %v497_v3  ;;  %348 = vmatpush.xpose.msk.msra.mxu3 %vm45_vm0, %v497_v3 }
   0xf   :  { %308 = vmatpush.xpose.msk.msra.mxu0 %vm45_vm0, %v497_v3  ;;  %346 = vmatpush.xpose.msk.msra.mxu1 %vm45_vm0, %v497_v3 }
  0x12   :  { %350 = vmatpush.xpose.msk.msra.mxu2 %vm45_vm0, %v510_v4  ;;  %351 = vmatpush.xpose.msk.msra.mxu3 %vm45_vm0, %v510_v4 }
  0x13   :  { %309 = vmatpush.xpose.msk.msra.mxu0 %vm45_vm0, %v510_v4  ;;  %349 = vmatpush.xpose.msk.msra.mxu1 %vm45_vm0, %v510_v4 }
  0x16   :  { %353 = vmatpush.xpose.msk.msra.mxu2 %vm45_vm0, %v523_v5  ;;  %354 = vmatpush.xpose.msk.msra.mxu3 %vm45_vm0, %v523_v5 }
  0x17   :  { %310 = vmatpush.xpose.msk.msra.mxu0 %vm45_vm0, %v523_v5  ;;  %352 = vmatpush.xpose.msk.msra.mxu1 %vm45_vm0, %v523_v5 }
  0x1a   :  { %356 = vmatpush.xpose.msk.msra.mxu2 %vm45_vm0, %v38_v6  ;;  %357 = vmatpush.xpose.msk.msra.mxu3 %vm45_vm0, %v38_v6 }
  0x1b   :  { %311 = vmatpush.xpose.msk.msra.mxu0 %vm45_vm0, %v38_v6  ;;  %355 = vmatpush.xpose.msk.msra.mxu1 %vm45_vm0, %v38_v6 }
  0x1e   :  { %359 = vmatpush.xpose.msk.msra.mxu2 %vm45_vm0, %v37_v7  ;;  %360 = vmatpush.xpose.msk.msra.mxu3 %vm45_vm0, %v37_v7 }
  0x1f   :  { %312 = vmatpush.xpose.msk.msra.mxu0 %vm45_vm0, %v37_v7  ;;  %358 = vmatpush.xpose.msk.msra.mxu1 %vm45_vm0, %v37_v7 }
  0x22   :  { %362 = vmatpush.xpose.msk.msra.mxu2 %vm45_vm0, %v36_v8  ;;  %363 = vmatpush.xpose.msk.msra.mxu3 %vm45_vm0, %v36_v8 }
  0x23   :  { %313 = vmatpush.xpose.msk.msra.mxu0 %vm45_vm0, %v36_v8  ;;  %361 = vmatpush.xpose.msk.msra.mxu1 %vm45_vm0, %v36_v8 }
  0x26   :  { %365 = vmatpush.xpose.msk.msra.mxu2 %vm45_vm0, %v35_v9  ;;  %366 = vmatpush.xpose.msk.msra.mxu3 %vm45_vm0, %v35_v9 }
  0x27   :  { %314 = vmatpush.xpose.msk.msra.mxu0 %vm45_vm0, %v35_v9  ;;  %364 = vmatpush.xpose.msk.msra.mxu1 %vm45_vm0, %v35_v9 }
  0x2a   :  { %368 = vmatpush.xpose.msk.msra.mxu2 %vm45_vm0, %v34_v10  ;;  %369 = vmatpush.xpose.msk.msra.mxu3 %vm45_vm0, %v34_v10 }
  0x2b   :  { %315 = vmatpush.xpose.msk.msra.mxu0 %vm45_vm0, %v34_v10  ;;  %367 = vmatpush.xpose.msk.msra.mxu1 %vm45_vm0, %v34_v10 }
  0x2e   :  { %371 = vmatpush.xpose.msk.msra.mxu2 %vm45_vm0, %v33_v11  ;;  %372 = vmatpush.xpose.msk.msra.mxu3 %vm45_vm0, %v33_v11 }
  0x2f   :  { %316 = vmatpush.xpose.msk.msra.mxu0 %vm45_vm0, %v33_v11  ;;  %370 = vmatpush.xpose.msk.msra.mxu1 %vm45_vm0, %v33_v11 }
  0x32   :  { %374 = vmatpush.xpose.msk.msra.mxu2 %vm45_vm0, %v32_v12  ;;  %375 = vmatpush.xpose.msk.msra.mxu3 %vm45_vm0, %v32_v12 }
  0x33   :  { %317 = vmatpush.xpose.msk.msra.mxu0 %vm45_vm0, %v32_v12  ;;  %373 = vmatpush.xpose.msk.msra.mxu1 %vm45_vm0, %v32_v12 }
  0x36   :  { %377 = vmatpush.xpose.msk.msra.mxu2 %vm45_vm0, %v31_v13  ;;  %378 = vmatpush.xpose.msk.msra.mxu3 %vm45_vm0, %v31_v13 }
  0x37   :  { %318 = vmatpush.xpose.msk.msra.mxu0 %vm45_vm0, %v31_v13  ;;  %376 = vmatpush.xpose.msk.msra.mxu1 %vm45_vm0, %v31_v13 }
  0x3a   :  { %380 = vmatpush.xpose.msk.msra.mxu2 %vm45_vm0, %v30_v14  ;;  %381 = vmatpush.xpose.msk.msra.mxu3 %vm45_vm0, %v30_v14 }
  0x3b   :  { %319 = vmatpush.xpose.msk.msra.mxu0 %vm45_vm0, %v30_v14  ;;  %379 = vmatpush.xpose.msk.msra.mxu1 %vm45_vm0, %v30_v14 }
  0x3e   :  { %383 = vmatpush.xpose.msk.msra.mxu2 %vm45_vm0, %v29_v15  ;;  %384 = vmatpush.xpose.msk.msra.mxu3 %vm45_vm0, %v29_v15 }
  0x3f   :  { %320 = vmatpush.xpose.msk.msra.mxu0 %vm45_vm0, %v29_v15  ;;  %382 = vmatpush.xpose.msk.msra.mxu1 %vm45_vm0, %v29_v15 }
  0x41   :  { %329 = vmatmul.msk.f32.vlgmr.msra.gmra.mxu2 %vm45_vm0, %v37_v7  ;;  %333 = vmatmul.msk.f32.vlgmr.msra.gmra.mxu3 %vm45_vm0, %v497_v3 }
  0x42   :  { %321 = vmatmul.msk.f32.vlgmr.msra.gmra.mxu0 %vm45_vm0, %v29_v15  ;;  %325 = vmatmul.msk.f32.vlgmr.msra.gmra.mxu1 %vm45_vm0, %v33_v11 }
  0x49   :  { %330 = vmatmul.msk.f32.gmra.mxu2 %vm45_vm0, %v38_v6  ;;  %334 = vmatmul.msk.f32.gmra.mxu3 %vm45_vm0, %v484_v2 }
  0x4a   :  { %322 = vmatmul.msk.f32.gmra.mxu0 %vm45_vm0, %v30_v14  ;;  %326 = vmatmul.msk.f32.gmra.mxu1 %vm45_vm0, %v34_v10 }
  0x51   :  { %331 = vmatmul.msk.f32.gmra.mxu2 %vm45_vm0, %v523_v5  ;;  %335 = vmatmul.msk.f32.gmra.mxu3 %vm45_vm0, %v471_v1 }
  0x52   :  { %323 = vmatmul.msk.f32.gmra.mxu0 %vm45_vm0, %v31_v13  ;;  %327 = vmatmul.msk.f32.gmra.mxu1 %vm45_vm0, %v35_v9 }
  0x59   :  { %332 = vmatmul.msk.f32.gmra.mxu2 %vm45_vm0, %v510_v4  ;;  %336 = vmatmul.msk.f32.gmra.mxu3 %vm45_vm0, %v462_v0 }
  0x5a   :  { %324 = vmatmul.msk.f32.gmra.mxu0 %vm45_vm0, %v32_v12  ;;  %328 = vmatmul.msk.f32.gmra.mxu1 %vm45_vm0, %v36_v8 }
  0xbf   :  { %v159_v16 = vpop.f32.mrf.mxu0  ;;  %v171_v17 = vpop.f32.mrf.mxu1 }
  0xc0   :  { %v207_v18 = vmul.f32 0.5, %v159_v16  ;;  %v211_v19 = vmul.f32 0.5, %v171_v17 }
  0xc2   :  { %388 = vtanh.f32 %v207_v18 }
  0xc3   :  { %390 = vtanh.f32 %v211_v19 }
  0xc4   :  { %v183_v20 = vpop.f32.mrf.mxu2  ;;  %v195_v21 = vpop.f32.mrf.mxu3 }
  0xc5   :  { %v215_v22 = vmul.f32 0.5, %v183_v20  ;;  %v219_v23 = vmul.f32 0.5, %v195_v21 }
  0xc7   :  { %392 = vtanh.f32 %v215_v22  ;;  %v162_v24 = vpop.f32.mrf.mxu0  ;;  %v174_v25 = vpop.f32.mrf.mxu1 }
  0xc8   :  { %v389_v26 = vpop.eup %388  ;;  %394 = vtanh.f32 %v219_v23  ;;  %v208_v27 = vmul.f32 0.5, %v162_v24  ;;  %v212_v28 = vmul.f32 0.5, %v174_v25 }
  0xc9   :  { %v391_v29 = vpop.eup %390  ;;  %v239_v30 = vmul.f32 0.5, %v389_v26 }
  0xca   :  { %v243_v31 = vmul.f32 0.5, %v391_v29  ;;  %396 = vtanh.f32 %v208_v27 }
  0xcb   :  { %v255_v32 = vadd.f32 0.5, %v239_v30  ;;  %398 = vtanh.f32 %v212_v28 }
  0xcc   :  { %v259_v33 = vadd.f32 0.5, %v243_v31  ;;  %v186_v34 = vpop.f32.mrf.mxu2  ;;  %v198_v35 = vpop.f32.mrf.mxu3 }
  0xcd   :  { %v393_v36 = vpop.eup %392  ;;  %271 = vst [vmem:[#allocation2] sm:$0xff] %v255_v32  ;;  %v216_v37 = vmul.f32 0.5, %v186_v34  ;;  %v220_v38 = vmul.f32 0.5, %v198_v35 }
  0xce   :  { %v395_v39 = vpop.eup %394  ;;  %275 = vst [vmem:[#allocation2 + $0x20] sm:$0xff] %v259_v33  ;;  %v247_v40 = vmul.f32 0.5, %v393_v36 }
  0xcf   :  { %v251_v41 = vmul.f32 0.5, %v395_v39  ;;  %400 = vtanh.f32 %v216_v37  ;;  %v165_v42 = vpop.f32.mrf.mxu0  ;;  %v177_v43 = vpop.f32.mrf.mxu1 }
  0xd0   :  { %v397_v44 = vpop.eup %396  ;;  %v263_v45 = vadd.f32 0.5, %v247_v40  ;;  %402 = vtanh.f32 %v220_v38  ;;  %v209_v46 = vmul.f32 0.5, %v165_v42  ;;  %v213_v47 = vmul.f32 0.5, %v177_v43 }
  0xd1   :  { %v399_v48 = vpop.eup %398  ;;  %v267_v49 = vadd.f32 0.5, %v251_v41  ;;  %v240_v50 = vmul.f32 0.5, %v397_v44 }
  0xd2   :  { %279 = vst [vmem:[#allocation2 + $0x40] sm:$0xff] %v263_v45  ;;  %v244_v51 = vmul.f32 0.5, %v399_v48  ;;  %404 = vtanh.f32 %v209_v46 }
  0xd3   :  { %283 = vst [vmem:[#allocation2 + $0x60] sm:$0xff] %v267_v49  ;;  %v256_v52 = vadd.f32 0.5, %v240_v50  ;;  %406 = vtanh.f32 %v213_v47 }
  0xd4   :  { %v260_v53 = vadd.f32 0.5, %v244_v51  ;;  %v189_v54 = vpop.f32.mrf.mxu2  ;;  %v201_v55 = vpop.f32.mrf.mxu3 }
  0xd5   :  { %v401_v56 = vpop.eup %400  ;;  %272 = vst [vmem:[#allocation2 + $0x8] sm:$0xff] %v256_v52  ;;  %v217_v57 = vmul.f32 0.5, %v189_v54  ;;  %v221_v58 = vmul.f32 0.5, %v201_v55 }
  0xd6   :  { %v403_v59 = vpop.eup %402  ;;  %276 = vst [vmem:[#allocation2 + $0x28] sm:$0xff] %v260_v53  ;;  %v248_v60 = vmul.f32 0.5, %v401_v56 }
  0xd7   :  { %v252_v61 = vmul.f32 0.5, %v403_v59  ;;  %408 = vtanh.f32 %v217_v57  ;;  %v168_v62 = vpop.f32.mrf.mxu0  ;;  %v180_v63 = vpop.f32.mrf.mxu1 }
  0xd8   :  { %v405_v0 = vpop.eup %404  ;;  %v264_v1 = vadd.f32 0.5, %v248_v60  ;;  %410 = vtanh.f32 %v221_v58  ;;  %v210_v2 = vmul.f32 0.5, %v168_v62  ;;  %v214_v3 = vmul.f32 0.5, %v180_v63 }
  0xd9   :  { %v407_v4 = vpop.eup %406  ;;  %v268_v5 = vadd.f32 0.5, %v252_v61  ;;  %v241_v6 = vmul.f32 0.5, %v405_v0 }
  0xda   :  { %280 = vst [vmem:[#allocation2 + $0x48] sm:$0xff] %v264_v1  ;;  %v245_v7 = vmul.f32 0.5, %v407_v4  ;;  %412 = vtanh.f32 %v210_v2 }
  0xdb   :  { %284 = vst [vmem:[#allocation2 + $0x68] sm:$0xff] %v268_v5  ;;  %v257_v8 = vadd.f32 0.5, %v241_v6  ;;  %414 = vtanh.f32 %v214_v3 }
  0xdc   :  { %v261_v9 = vadd.f32 0.5, %v245_v7  ;;  %v192_v10 = vpop.f32.mrf.mxu2  ;;  %v204_v11 = vpop.f32.mrf.mxu3 }
  0xdd   :  { %v409_v12 = vpop.eup %408  ;;  %273 = vst [vmem:[#allocation2 + $0x10] sm:$0xff] %v257_v8  ;;  %v218_v13 = vmul.f32 0.5, %v192_v10  ;;  %v222_v14 = vmul.f32 0.5, %v204_v11 }
  0xde   :  { %v411_v15 = vpop.eup %410  ;;  %277 = vst [vmem:[#allocation2 + $0x30] sm:$0xff] %v261_v9  ;;  %v249_v16 = vmul.f32 0.5, %v409_v12 }
  0xdf   :  { %v253_v17 = vmul.f32 0.5, %v411_v15  ;;  %416 = vtanh.f32 %v218_v13 }
  0xe0   :  { %v413_v18 = vpop.eup %412  ;;  %v265_v19 = vadd.f32 0.5, %v249_v16  ;;  %418 = vtanh.f32 %v222_v14 }
  0xe1   :  { %v415_v20 = vpop.eup %414  ;;  %v269_v21 = vadd.f32 0.5, %v253_v17  ;;  %v242_v22 = vmul.f32 0.5, %v413_v18 }
  0xe2   :  { %281 = vst [vmem:[#allocation2 + $0x50] sm:$0xff] %v265_v19  ;;  %v246_v23 = vmul.f32 0.5, %v415_v20 }
  0xe3   :  { %285 = vst [vmem:[#allocation2 + $0x70] sm:$0xff] %v269_v21  ;;  %v258_v24 = vadd.f32 0.5, %v242_v22 }
  0xe4   :  { %v262_v25 = vadd.f32 0.5, %v246_v23 }
  0xe5   :  { %v417_v26 = vpop.eup %416  ;;  %274 = vst [vmem:[#allocation2 + $0x18] sm:$0xff] %v258_v24 }
  0xe6   :  { %v419_v27 = vpop.eup %418  ;;  %278 = vst [vmem:[#allocation2 + $0x38] sm:$0xff] %v262_v25  ;;  %v250_v28 = vmul.f32 0.5, %v417_v26 }
  0xe7   :  { %v254_v29 = vmul.f32 0.5, %v419_v27 }
  0xe8   :  { %v266_v30 = vadd.f32 0.5, %v250_v28 }
  0xe9   :  { %v270_v31 = vadd.f32 0.5, %v254_v29 }
  0xea   :  { %282 = vst [vmem:[#allocation2 + $0x58] sm:$0xff] %v266_v30 }
  0xeb   :  { %286 = vst [vmem:[#allocation2 + $0x78] sm:$0xff] %v270_v31 }
  0xec   :  { %299 = dma.vmem_to_hbm [thread:$0]  %s292_s9, 2048, %s294_s12, [#allocation3], %s447_s13, %s447_s13, %s448_s14  }
  0xed   :  { %444 = dma.done.wait [#allocation3], 2048  }
  0xee   :  { %445 = vsyncadd [#allocation3], 4294965248 }
  0xef   :  { %304 = vsyncpa [#allocation3], 1 }

</bundles_post_ra>
